<compile_context>
chip_gen: v6e
topology: v6e:2x2x1
jax: 0.10.0
libtpu: 0.0.40
codegen_flags: <defaults>
</compile_context>

<pallas_src>
import jax
import jax.numpy as jnp
from jax import lax
from jax.experimental import pallas as pl
from jax.experimental.pallas import tpu as pltpu


def _round_up(x, m):
    return ((x + m - 1) // m) * m


def _physical_vmem_bytes():
    """Per-core physical VMEM; conservative (v7x) fallback if unqueryable."""
    try:
        return int(pltpu.get_tpu_info().vmem_capacity_bytes)
    except Exception:
        return 64 * 1024 * 1024


# -----------------------------------------------------------------------------
# Kernels
# -----------------------------------------------------------------------------
def _embed_resident_kernel(labels_ref, table_ref, out_ref):
    """out[j] = table[labels[j]] via a one-hot MXU contraction.

    labels_ref: (TB, 1) int32  — batch tile of labels
    table_ref:  (Vp, D)        — whole padded table, VMEM-resident
    out_ref:    (TB, D)
    """
    labels = labels_ref[...]                                   # (TB, 1)
    tb = labels.shape[0]
    vp = table_ref.shape[0]
    class_ids = lax.broadcasted_iota(jnp.int32, (tb, vp), 1)
    one_hot = (class_ids == labels).astype(table_ref.dtype)    # (TB, Vp)
    out_ref[...] = jnp.dot(
        one_hot, table_ref[...], preferred_element_type=jnp.float32
    ).astype(out_ref.dtype)


def _embed_streaming_kernel(labels_ref, table_ref, out_ref, acc_ref):
    """V-streaming variant: class axis tiled over grid axis 1 (accumulator P3).

    labels_ref: (TB, 1) int32
    table_ref:  (TV, D)  — one class-axis chunk of the table
    out_ref:    (TB, D)
    acc_ref:    (TB, D) float32 scratch
    """
    k = pl.program_id(1)

    @pl.when(k == 0)
    def _():
        acc_ref[...] = jnp.zeros_like(acc_ref)

    labels = labels_ref[...]                                   # (TB, 1)
    tb = labels.shape[0]
    tv = table_ref.shape[0]
    class_ids = k * tv + lax.broadcasted_iota(jnp.int32, (tb, tv), 1)
    one_hot = (class_ids == labels).astype(table_ref.dtype)    # (TB, TV)
    acc_ref[...] += jnp.dot(
        one_hot, table_ref[...], preferred_element_type=jnp.float32
    )

    @pl.when(k == pl.num_programs(1) - 1)
    def _():
        out_ref[...] = acc_ref[...].astype(out_ref.dtype)


# -----------------------------------------------------------------------------
# Wrapper
# -----------------------------------------------------------------------------
def label_embedder_forward(labels, embedding_table, *, block_b=256,
                           block_v=2048, force_streaming=False):
    """Pallas equivalent of LabelEmbedder.forward.

    labels:          (B,) integer labels
    embedding_table: (num_classes + 1, cond_size) float table
    returns:         (B, cond_size) in the table's dtype
    """
    labels = labels.astype(jnp.int32)
    B = labels.shape[0]
    V, D = embedding_table.shape
    dtype = embedding_table.dtype
    itemsize = jnp.dtype(dtype).itemsize

    # Bounds safety (intentional deviation: nn.Embedding would raise).
    labels = jnp.clip(labels, 0, V - 1)

    # Pad the class axis to a 128-multiple so the one-hot contraction is
    # lane/MXU aligned. Padded rows are zero and never selected (labels < V).
    Vp = _round_up(V, 128)
    table = embedding_table
    if Vp != V:
        table = jnp.pad(table, ((0, Vp - V), (0, 0)))

    # Batch tile: sublane-dense multiple of 8, capped at block_b.
    TB = min(_round_up(block_b, 8), _round_up(B, 8))
    B_pad = _round_up(B, TB)
    # Padded batch rows reuse label 0; they produce real class-0 embeddings in
    # out_padded and are sliced off before returning.
    labels_col = jnp.pad(labels, (0, B_pad - B)).reshape(B_pad, 1)

    # ---- VMEM budgeting --------------------------------------------------
    headroom = 4 * 1024 * 1024
    budget = int(_physical_vmem_bytes() * 0.75) - headroom     # per-core cap

    table_bytes = Vp * D * itemsize
    # labels + output tiles, double-buffered by the pipeliner.
    io_bytes = 2 * (TB * 4) + 2 * (TB * D * itemsize)
    # one-hot operand + f32 matmul result materialized in VMEM.
    interm_bytes = TB * Vp * itemsize + TB * D * 4

    resident_need = table_bytes + io_bytes + interm_bytes + headroom
    use_resident = (not force_streaming) and (resident_need <= budget)

    if use_resident:
        # ---- Resident-table path ------------------------------------------
        def resident_call(single_buffer_table):
            table_buffers = 1 if single_buffer_table else 2
            vmem_need = (table_buffers * table_bytes + io_bytes
                         + interm_bytes + headroom)
            if single_buffer_table:
                # Constant block index: one DMA, one buffer.
                table_spec = pl.BlockSpec((Vp, D), lambda i: (0, 0),
                                          pipeline_mode=pl.Buffered(1))
            else:
                table_spec = pl.BlockSpec((Vp, D), lambda i: (0, 0))
            return pl.pallas_call(
                _embed_resident_kernel,
                out_shape=jax.ShapeDtypeStruct((B_pad, D), dtype),
                grid_spec=pltpu.PrefetchScalarGridSpec(
                    num_scalar_prefetch=0,
                    grid=(B_pad // TB,),
                    in_specs=[
                        pl.BlockSpec((TB, 1), lambda i: (i, 0)),
                        table_spec,
                    ],
                    out_specs=pl.BlockSpec((TB, D), lambda i: (i, 0)),
                ),
                compiler_params=pltpu.CompilerParams(
                    dimension_semantics=("parallel",),
                    vmem_limit_bytes=int(min(vmem_need, budget)),
                ),
            )(labels_col, table)

        try:
            out_padded = resident_call(True)
        except Exception:
            # pl.Buffered(1) rejected on this jax version — fall back to the
            # default spec. The constant block index still means the table is
            # only DMA'd once; it merely costs a second VMEM buffer.
            out_padded = resident_call(False)
    else:
        # ---- V-streaming path (table too large to sit resident) -----------
        TV = min(_round_up(block_v, 128), Vp)
        Vp_s = _round_up(Vp, TV)
        if Vp_s != Vp:
            table = jnp.pad(table, ((0, Vp_s - Vp), (0, 0)))
        chunk_bytes = TV * D * itemsize
        vmem_need = (2 * chunk_bytes                      # double-buffered chunks
                     + io_bytes
                     + TB * TV * itemsize + TB * D * 4    # one-hot + result
                     + TB * D * 4                         # f32 accumulator
                     + headroom)
        out_padded = pl.pallas_call(
            _embed_streaming_kernel,
            out_shape=jax.ShapeDtypeStruct((B_pad, D), dtype),
            grid_spec=pltpu.PrefetchScalarGridSpec(
                num_scalar_prefetch=0,
                grid=(B_pad // TB, Vp_s // TV),
                in_specs=[
                    pl.BlockSpec((TB, 1), lambda i, k: (i, 0)),
                    pl.BlockSpec((TV, D), lambda i, k: (k, 0)),
                ],
                out_specs=pl.BlockSpec((TB, D), lambda i, k: (i, 0)),
                scratch_shapes=[pltpu.VMEM((TB, D), jnp.float32)],
            ),
            compiler_params=pltpu.CompilerParams(
                dimension_semantics=("parallel", "arbitrary"),
                vmem_limit_bytes=int(min(vmem_need, budget)),
            ),
        )(labels_col, table)

    return out_padded[:B]


if __name__ == "__main__":
    key = jax.random.PRNGKey(0)
    k1, k2, k3, k4 = jax.random.split(key, 4)

    # ---- Test 1: resident-table path (small DiT-consistent shapes) --------
    num_classes, cond_size, batch = 10, 128, 8
    # nn.Embedding default init: N(0, 1); num_classes + 1 rows (extra row is
    # the classifier-free-guidance "dropped label" token).
    table = jax.random.normal(k1, (num_classes + 1, cond_size),
                              dtype=jnp.float32)
    labels = jax.random.randint(k2, (batch,), 0, num_classes, dtype=jnp.int32)
    labels = labels.at[0].set(num_classes)   # exercise the CFG "null" class id

    out = jax.block_until_ready(label_embedder_forward(labels, table))
    ref = jnp.take(table, labels, axis=0)
    assert out.shape == (batch, cond_size)
    assert out.dtype == table.dtype
    assert jnp.allclose(out, ref, rtol=1e-5, atol=1e-5), \
        "resident-path embedding mismatch vs reference"

    # ---- Test 2: V-streaming path (class axis tiled + accumulator) --------
    num_classes2, cond_size2, batch2 = 300, 256, 16
    table2 = jax.random.normal(k3, (num_classes2 + 1, cond_size2),
                               dtype=jnp.float32)
    labels2 = jax.random.randint(k4, (batch2,), 0, num_classes2 + 1,
                                 dtype=jnp.int32)
    out2 = jax.block_until_ready(
        label_embedder_forward(labels2, table2, block_v=128,
                               force_streaming=True))
    ref2 = jnp.take(table2, labels2, axis=0)
    assert out2.shape == (batch2, cond_size2)
    assert jnp.allclose(out2, ref2, rtol=1e-5, atol=1e-5), \
        "streaming-path embedding mismatch vs reference"

    print("KERNEL_OK")
</pallas_src>

<mosaic_0001>
module attributes {stable_mosaic.version = 11 : i64} {
  func.func @_embed_resident_kernel(%arg0: i32, %arg1: memref<8x1xi32, #tpu.memory_space<vmem>>, %arg2: memref<128x128xf32, #tpu.memory_space<vmem>>, %arg3: memref<8x128xf32, #tpu.memory_space<vmem>>) attributes {dimension_semantics = [#tpu.dimension_semantics<parallel>], iteration_bounds = array<i64: 1>, scalar_prefetch = 0 : i64, scratch_operands = 0 : i64, tpu.core_type = #tpu.core_type<tc>, window_params = [{transform_indices = @transform_0, window_bounds = array<i64: 8, 1>}, {pipeline_mode = #tpu.pipeline_mode<synchronous>, transform_indices = @transform_1, window_bounds = array<i64: 128, 128>}, {transform_indices = @transform_2, window_bounds = array<i64: 8, 128>}]} {
    %c0 = arith.constant 0 : index
    %c0_0 = arith.constant 0 : index
    %0 = vector.load %arg1[%c0, %c0_0] : memref<8x1xi32, #tpu.memory_space<vmem>>, vector<8x1xi32>
    %1 = tpu.iota {dimensions = array<i32: 1>} : vector<8x128xi32>
    %2 = vector.broadcast %0 : vector<8x1xi32> to vector<8x128xi32>
    %3 = arith.cmpi eq, %1, %2 : vector<8x128xi32>
    %4 = arith.extui %3 : vector<8x128xi1> to vector<8x128xi32>
    %5 = arith.sitofp %4 : vector<8x128xi32> to vector<8x128xf32>
    %c0_1 = arith.constant 0 : index
    %c0_2 = arith.constant 0 : index
    %6 = vector.load %arg2[%c0_1, %c0_2] : memref<128x128xf32, #tpu.memory_space<vmem>>, vector<128x128xf32>
    %cst = arith.constant dense<0.000000e+00> : vector<8x128xf32>
    %7 = tpu.matmul %5, %6, %cst {dimension_numbers = #tpu.dot_dimension_numbers<[1], [0], [0], [1], [0, 0, 1, 1], [], []>} : vector<8x128xf32>, vector<128x128xf32>, vector<8x128xf32> -> vector<8x128xf32>
    %c0_3 = arith.constant 0 : index
    %c0_4 = arith.constant 0 : index
    %8 = vector.load %arg3[%c0_3, %c0_4] : memref<8x128xf32, #tpu.memory_space<vmem>>, vector<8x128xf32>
    tpu.vector_store %arg3[%c0_3, %c0_4], %7 {strides = array<i32>} : memref<8x128xf32, #tpu.memory_space<vmem>>, vector<8x128xf32>,
    return
  }
  func.func @transform_0(%arg0: i32) -> (i32, i32) {
    %c0_i32 = arith.constant 0 : i32
    %c0_i32_0 = arith.constant 0 : i32
    return %arg0, %c0_i32 : i32, i32
  }
  func.func @transform_1(%arg0: i32) -> (i32, i32) {
    %c0_i32 = arith.constant 0 : i32
    %c0_i32_0 = arith.constant 0 : i32
    %c0_i32_1 = arith.constant 0 : i32
    return %c0_i32, %c0_i32_0 : i32, i32
  }
  func.func @transform_2(%arg0: i32) -> (i32, i32) {
    %c0_i32 = arith.constant 0 : i32
    %c0_i32_0 = arith.constant 0 : i32
    return %arg0, %c0_i32 : i32, i32
  }
}

module attributes {stable_mosaic.version = 11 : i64} {
  func.func @_embed_resident_kernel(%arg0: i32, %arg1: memref<8x1xi32, #tpu.memory_space<vmem>>, %arg2: memref<128x128xf32, #tpu.memory_space<vmem>>, %arg3: memref<8x128xf32, #tpu.memory_space<vmem>>) attributes {dimension_semantics = [#tpu.dimension_semantics<parallel>], iteration_bounds = array<i64: 1>, scalar_prefetch = 0 : i64, scratch_operands = 0 : i64, tpu.core_type = #tpu.core_type<tc>, window_params = [{transform_indices = @transform_0, window_bounds = array<i64: 8, 1>}, {pipeline_mode = #tpu.pipeline_mode<synchronous>, transform_indices = @transform_1, window_bounds = array<i64: 128, 128>}, {transform_indices = @transform_2, window_bounds = array<i64: 8, 128>}]} {
    %c0 = arith.constant 0 : index
    %c0_0 = arith.constant 0 : index
    %0 = vector.load %arg1[%c0, %c0_0] : memref<8x1xi32, #tpu.memory_space<vmem>>, vector<8x1xi32>
    %1 = tpu.iota {dimensions = array<i32: 1>} : vector<8x128xi32>
    %2 = vector.broadcast %0 : vector<8x1xi32> to vector<8x128xi32>
    %3 = arith.cmpi eq, %1, %2 : vector<8x128xi32>
    %4 = arith.extui %3 : vector<8x128xi1> to vector<8x128xi32>
    %5 = arith.sitofp %4 : vector<8x128xi32> to vector<8x128xf32>
    %c0_1 = arith.constant 0 : index
    %c0_2 = arith.constant 0 : index
    %6 = vector.load %arg2[%c0_1, %c0_2] : memref<128x128xf32, #tpu.memory_space<vmem>>, vector<128x128xf32>
    %cst = arith.constant dense<0.000000e+00> : vector<8x128xf32>
    %7 = tpu.matmul %5, %6, %cst {dimension_numbers = #tpu.dot_dimension_numbers<[1], [0], [0], [1], [0, 0, 1, 1], [], []>} : vector<8x128xf32>, vector<128x128xf32>, vector<8x128xf32> -> vector<8x128xf32>
    %c0_3 = arith.constant 0 : index
    %c0_4 = arith.constant 0 : index
    %8 = vector.load %arg3[%c0_3, %c0_4] : memref<8x128xf32, #tpu.memory_space<vmem>>, vector<8x128xf32>
    tpu.vector_store %arg3[%c0_3, %c0_4], %7 {strides = array<i32>} : memref<8x128xf32, #tpu.memory_space<vmem>>, vector<8x128xf32>,
    return
  }
  func.func @transform_0(%arg0: i32) -> (i32, i32) {
    %c0_i32 = arith.constant 0 : i32
    %c0_i32_0 = arith.constant 0 : i32
    return %arg0, %c0_i32 : i32, i32
  }
  func.func @transform_1(%arg0: i32) -> (i32, i32) {
    %c0_i32 = arith.constant 0 : i32
    %c0_i32_0 = arith.constant 0 : i32
    %c0_i32_1 = arith.constant 0 : i32
    return %c0_i32, %c0_i32_0 : i32, i32
  }
  func.func @transform_2(%arg0: i32) -> (i32, i32) {
    %c0_i32 = arith.constant 0 : i32
    %c0_i32_0 = arith.constant 0 : i32
    return %arg0, %c0_i32 : i32, i32
  }
}

</mosaic_0001>

<bundles_post_ra>
// kernel: tpu_custom_call.1
= control target key start
LH: loop header
LB: loop body
LE: loop exit
PB: predicated region body
PF: predicated region fallthrough
CT: control target
= control target key end

     0   :  { %7 = vsyncpa [#allocation3], 0  ;;  %s276_s0 = inlined_call_operand.vmem [shape: s32[8,1], index: 0, kind: input, shape index: {}]   ;;  %s277_s1 = inlined_call_operand.hbm [shape: f32[128,128], index: 1, kind: input, shape index: {}]   ;;  %s278_s2 = inlined_call_operand.hbm [shape: f32[8,128], index: 2, kind: output, shape index: {}]  }
   0x1   :  { %8 = vsyncpa [#allocation4], 0  ;;  %s244_s9 = smov [#allocation2]  }
   0x2   :  { %s16_s10 = sshll.u32 %s244_s9, 4  ;;  %s17_s10 = int_to_ptr.vmem [resolvable:$true] %s16_s10 }
   0x3   :  { %s208_s11 = scalar_lea.vmem %s17_s10, 2048  ;;  %p213_p1 = scmp.lt.s32.totalorder %s17_s10, %s17_s10 }
   0x4   :  { %p209_p0 = scmp.ne.s32.totalorder %s17_s10, %s208_s11  ;;  %p214_p2 = scmp.lt.s32.totalorder %s208_s11, %s208_s11 }
   0x6   :  { %p215_p3 = por %p214_p2, %p213_p1 }
   0x8   :  { %p216_p4 = pnand %p215_p3, %p209_p0 }
   0xa   :  { %219 = shalt.err (!%p216_p4)
}
   0xb   :  { %s245_s12 = smov 128   ;;  %s246_s13 = smov 8  }
   0xc   :  { %22 = dma.hbm_to_vmem [thread:$0]  %s277_s1, 2048, %s17_s10, [#allocation3], %s245_s12, %s245_s12, %s246_s13  }
   0xd   :  { %240 = dma.done.wait [#allocation3], 2048  }
   0xe   :  { %241 = vsyncadd [#allocation3], 4294965248  ;;  %v247_v0 = vmov 0   ;;  %v248_v1 = vmov 0.0   ;;  %vm249_vm0 = vmmov 0   ;;  %v26_v2 = vld [vmem:[%s276_s0] sm:$0xff]  ;;  %v27_v19 = vlaneseq }
   0xf   :  { %199 = vset.pattern.permute.xlu0 %v247_v0  ;;  %156 = vmatprep.subr.mxu0 %v248_v1  ;;  %v50_v3 = vld [vmem:[#allocation2 + $0x78] sm:$0xff]  ;;  %v49_v4 = vld [vmem:[#allocation2 + $0x70] sm:$0xff]  ;;  %v48_v5 = vld [vmem:[#allocation2 + $0x68] sm:$0xff]  ;;  %v250_v22 = vmov 1.0   ;;  %s251_s0 = smov [#allocation5]  }
  0x10   :  { %188 = vmatprep.mubr.msk.f32.mxu0 %vm249_vm0, %v248_v1  ;;  %30 = vperm.xlu0 %199, %v26_v2   ;;  %v47_v6 = vld [vmem:[#allocation2 + $0x60] sm:$0xff]  ;;  %v46_v7 = vld [vmem:[#allocation2 + $0x58] sm:$0xff]  ;;  %v45_v8 = vld [vmem:[#allocation2 + $0x50] sm:$0xff]  ;;  %v28_v20 = vand.u32 127, %v27_v19  ;;  %s128_s1 = sshll.u32 %s251_s0, 4  ;;  %s129_s1 = int_to_ptr.vmem [resolvable:$true] %s128_s1 }
  0x11   :  { %157 = vmatpush3.msra.mxu0 %v50_v3  ;;  %v44_v9 = vld [vmem:[#allocation2 + $0x48] sm:$0xff]  ;;  %v43_v10 = vld [vmem:[#allocation2 + $0x40] sm:$0xff]  ;;  %v42_v11 = vld [vmem:[#allocation2 + $0x38] sm:$0xff]  ;;  %s220_s18 = scalar_lea.vmem %s129_s1, 128  ;;  %p225_p6 = scmp.lt.s32.totalorder %s129_s1, %s129_s1 }
  0x12   :  { %158 = vmatprep.subr.mxu0 %v248_v1  ;;  %v41_v12 = vld [vmem:[#allocation2 + $0x30] sm:$0xff]  ;;  %v40_v13 = vld [vmem:[#allocation2 + $0x28] sm:$0xff]  ;;  %v39_v14 = vld [vmem:[#allocation2 + $0x20] sm:$0xff]  ;;  %p221_p5 = scmp.ne.s32.totalorder %s129_s1, %s220_s18  ;;  %p226_p7 = scmp.lt.s32.totalorder %s220_s18, %s220_s18 }
  0x13   :  { %159 = vmatpush3.msra.mxu0 %v49_v4  ;;  %v38_v15 = vld [vmem:[#allocation2 + $0x18] sm:$0xff]  ;;  %v37_v16 = vld [vmem:[#allocation2 + $0x10] sm:$0xff]  ;;  %v36_v17 = vld [vmem:[#allocation2 + $0x8] sm:$0xff] }
  0x14   :  { %160 = vmatprep.subr.mxu0 %v248_v1  ;;  %v35_v18 = vld [vmem:[#allocation2] sm:$0xff]  ;;  %p227_p8 = por %p226_p7, %p225_p6 }
  0x15   :  { %161 = vmatpush3.msra.mxu0 %v48_v5 }
  0x16   :  { %162 = vmatprep.subr.mxu0 %v248_v1  ;;  %p228_p9 = pnand %p227_p8, %p221_p5 }
  0x17   :  { %163 = vmatpush3.msra.mxu0 %v47_v6 }
  0x18   :  { %164 = vmatprep.subr.mxu0 %v248_v1 }
  0x19   :  { %165 = vmatpush3.msra.mxu0 %v46_v7 }
  0x1a   :  { %166 = vmatprep.subr.mxu0 %v248_v1 }
  0x1b   :  { %167 = vmatpush3.msra.mxu0 %v45_v8 }
  0x1c   :  { %168 = vmatprep.subr.mxu0 %v248_v1 }
  0x1d   :  { %169 = vmatpush3.msra.mxu0 %v44_v9 }
  0x1e   :  { %170 = vmatprep.subr.mxu0 %v248_v1 }
  0x1f   :  { %171 = vmatpush3.msra.mxu0 %v43_v10 }
  0x20   :  { %172 = vmatprep.subr.mxu0 %v248_v1 }
  0x21   :  { %173 = vmatpush3.msra.mxu0 %v42_v11 }
  0x22   :  { %174 = vmatprep.subr.mxu0 %v248_v1 }
  0x23   :  { %175 = vmatpush3.msra.mxu0 %v41_v12 }
  0x24   :  { %176 = vmatprep.subr.mxu0 %v248_v1 }
  0x25   :  { %177 = vmatpush3.msra.mxu0 %v40_v13 }
  0x26   :  { %178 = vmatprep.subr.mxu0 %v248_v1 }
  0x27   :  { %179 = vmatpush3.msra.mxu0 %v39_v14 }
  0x28   :  { %180 = vmatprep.subr.mxu0 %v248_v1 }
  0x29   :  { %181 = vmatpush3.msra.mxu0 %v38_v15 }
  0x2a   :  { %182 = vmatprep.subr.mxu0 %v248_v1 }
  0x2b   :  { %183 = vmatpush3.msra.mxu0 %v37_v16 }
  0x2c   :  { %184 = vmatprep.subr.mxu0 %v248_v1 }
  0x2d   :  { %185 = vmatpush3.msra.mxu0 %v36_v17 }
  0x2e   :  { %186 = vmatprep.subr.mxu0 %v248_v1 }
  0x2f   :  { %187 = vmatpush3.msra.mxu0 %v35_v18 }
  0x8b   :  { %v31_v21 = vpop.permute.xlu0 %30 }
  0x8c   :  { %vm32_vm1 = vcmp.eq.s32.totalorder %v28_v20, %v31_v21 }
  0x8d   :  { %189 = vmatmul.mubr.msk.f32.vlgmr.msra.gmra.mxu0 %vm32_vm1, %v250_v22 }
 0x14d   :  { %v117_v23 = vpop.f32.mrf.mxu0 }
 0x14e   :  { %121 = vst [vmem:[#allocation5] sm:$0xff] %v117_v23 }
 0x14f   :  { %v190_v24 = vpop.f32.mrf.mxu0 }
 0x150   :  { %231 = shalt.err (!%p228_p9)
}
 0x151   :  { %131 = dma.vmem_to_hbm [thread:$0]  %s129_s1, 128, %s278_s2, [#allocation4]  }
 0x152   :  { %242 = dma.done.wait [#allocation4], 128  }
 0x153   :  { %243 = vsyncadd [#allocation4], 4294967168 }
 0x154   :  { %135 = vsyncpa [#allocation3], 1 }
 0x155   :  { %136 = vsyncpa [#allocation4], 1 }

// kernel: tpu_custom_call.1
= control target key start
LH: loop header
LB: loop body
LE: loop exit
PB: predicated region body
PF: predicated region fallthrough
CT: control target
= control target key end

     0   :  { %7 = vsyncpa [#allocation3], 0  ;;  %s276_s0 = inlined_call_operand.vmem [shape: s32[8,1], index: 0, kind: input, shape index: {}]   ;;  %s277_s1 = inlined_call_operand.hbm [shape: f32[128,128], index: 1, kind: input, shape index: {}]   ;;  %s278_s2 = inlined_call_operand.hbm [shape: f32[8,128], index: 2, kind: output, shape index: {}]  }
   0x1   :  { %8 = vsyncpa [#allocation4], 0  ;;  %s244_s9 = smov [#allocation2]  }
   0x2   :  { %s16_s10 = sshll.u32 %s244_s9, 4  ;;  %s17_s10 = int_to_ptr.vmem [resolvable:$true] %s16_s10 }
   0x3   :  { %s208_s11 = scalar_lea.vmem %s17_s10, 2048  ;;  %p213_p1 = scmp.lt.s32.totalorder %s17_s10, %s17_s10 }
   0x4   :  { %p209_p0 = scmp.ne.s32.totalorder %s17_s10, %s208_s11  ;;  %p214_p2 = scmp.lt.s32.totalorder %s208_s11, %s208_s11 }
   0x6   :  { %p215_p3 = por %p214_p2, %p213_p1 }
   0x8   :  { %p216_p4 = pnand %p215_p3, %p209_p0 }
   0xa   :  { %219 = shalt.err (!%p216_p4)
}
   0xb   :  { %s245_s12 = smov 128   ;;  %s246_s13 = smov 8  }
   0xc   :  { %22 = dma.hbm_to_vmem [thread:$0]  %s277_s1, 2048, %s17_s10, [#allocation3], %s245_s12, %s245_s12, %s246_s13  }
   0xd   :  { %240 = dma.done.wait [#allocation3], 2048  }
   0xe   :  { %241 = vsyncadd [#allocation3], 4294965248  ;;  %v247_v0 = vmov 0   ;;  %v248_v1 = vmov 0.0   ;;  %vm249_vm0 = vmmov 0   ;;  %v26_v2 = vld [vmem:[%s276_s0] sm:$0xff]  ;;  %v27_v19 = vlaneseq }
   0xf   :  { %199 = vset.pattern.permute.xlu0 %v247_v0  ;;  %156 = vmatprep.subr.mxu0 %v248_v1  ;;  %v50_v3 = vld [vmem:[#allocation2 + $0x78] sm:$0xff]  ;;  %v49_v4 = vld [vmem:[#allocation2 + $0x70] sm:$0xff]  ;;  %v48_v5 = vld [vmem:[#allocation2 + $0x68] sm:$0xff]  ;;  %v250_v22 = vmov 1.0   ;;  %s251_s0 = smov [#allocation5]  }
  0x10   :  { %188 = vmatprep.mubr.msk.f32.mxu0 %vm249_vm0, %v248_v1  ;;  %30 = vperm.xlu0 %199, %v26_v2   ;;  %v47_v6 = vld [vmem:[#allocation2 + $0x60] sm:$0xff]  ;;  %v46_v7 = vld [vmem:[#allocation2 + $0x58] sm:$0xff]  ;;  %v45_v8 = vld [vmem:[#allocation2 + $0x50] sm:$0xff]  ;;  %v28_v20 = vand.u32 127, %v27_v19  ;;  %s128_s1 = sshll.u32 %s251_s0, 4  ;;  %s129_s1 = int_to_ptr.vmem [resolvable:$true] %s128_s1 }
  0x11   :  { %157 = vmatpush3.msra.mxu0 %v50_v3  ;;  %v44_v9 = vld [vmem:[#allocation2 + $0x48] sm:$0xff]  ;;  %v43_v10 = vld [vmem:[#allocation2 + $0x40] sm:$0xff]  ;;  %v42_v11 = vld [vmem:[#allocation2 + $0x38] sm:$0xff]  ;;  %s220_s18 = scalar_lea.vmem %s129_s1, 128  ;;  %p225_p6 = scmp.lt.s32.totalorder %s129_s1, %s129_s1 }
  0x12   :  { %158 = vmatprep.subr.mxu0 %v248_v1  ;;  %v41_v12 = vld [vmem:[#allocation2 + $0x30] sm:$0xff]  ;;  %v40_v13 = vld [vmem:[#allocation2 + $0x28] sm:$0xff]  ;;  %v39_v14 = vld [vmem:[#allocation2 + $0x20] sm:$0xff]  ;;  %p221_p5 = scmp.ne.s32.totalorder %s129_s1, %s220_s18  ;;  %p226_p7 = scmp.lt.s32.totalorder %s220_s18, %s220_s18 }
  0x13   :  { %159 = vmatpush3.msra.mxu0 %v49_v4  ;;  %v38_v15 = vld [vmem:[#allocation2 + $0x18] sm:$0xff]  ;;  %v37_v16 = vld [vmem:[#allocation2 + $0x10] sm:$0xff]  ;;  %v36_v17 = vld [vmem:[#allocation2 + $0x8] sm:$0xff] }
  0x14   :  { %160 = vmatprep.subr.mxu0 %v248_v1  ;;  %v35_v18 = vld [vmem:[#allocation2] sm:$0xff]  ;;  %p227_p8 = por %p226_p7, %p225_p6 }
  0x15   :  { %161 = vmatpush3.msra.mxu0 %v48_v5 }
  0x16   :  { %162 = vmatprep.subr.mxu0 %v248_v1  ;;  %p228_p9 = pnand %p227_p8, %p221_p5 }
  0x17   :  { %163 = vmatpush3.msra.mxu0 %v47_v6 }
  0x18   :  { %164 = vmatprep.subr.mxu0 %v248_v1 }
  0x19   :  { %165 = vmatpush3.msra.mxu0 %v46_v7 }
  0x1a   :  { %166 = vmatprep.subr.mxu0 %v248_v1 }
  0x1b   :  { %167 = vmatpush3.msra.mxu0 %v45_v8 }
  0x1c   :  { %168 = vmatprep.subr.mxu0 %v248_v1 }
  0x1d   :  { %169 = vmatpush3.msra.mxu0 %v44_v9 }
  0x1e   :  { %170 = vmatprep.subr.mxu0 %v248_v1 }
  0x1f   :  { %171 = vmatpush3.msra.mxu0 %v43_v10 }
  0x20   :  { %172 = vmatprep.subr.mxu0 %v248_v1 }
  0x21   :  { %173 = vmatpush3.msra.mxu0 %v42_v11 }
  0x22   :  { %174 = vmatprep.subr.mxu0 %v248_v1 }
  0x23   :  { %175 = vmatpush3.msra.mxu0 %v41_v12 }
  0x24   :  { %176 = vmatprep.subr.mxu0 %v248_v1 }
  0x25   :  { %177 = vmatpush3.msra.mxu0 %v40_v13 }
  0x26   :  { %178 = vmatprep.subr.mxu0 %v248_v1 }
  0x27   :  { %179 = vmatpush3.msra.mxu0 %v39_v14 }
  0x28   :  { %180 = vmatprep.subr.mxu0 %v248_v1 }
  0x29   :  { %181 = vmatpush3.msra.mxu0 %v38_v15 }
  0x2a   :  { %182 = vmatprep.subr.mxu0 %v248_v1 }
  0x2b   :  { %183 = vmatpush3.msra.mxu0 %v37_v16 }
  0x2c   :  { %184 = vmatprep.subr.mxu0 %v248_v1 }
  0x2d   :  { %185 = vmatpush3.msra.mxu0 %v36_v17 }
  0x2e   :  { %186 = vmatprep.subr.mxu0 %v248_v1 }
  0x2f   :  { %187 = vmatpush3.msra.mxu0 %v35_v18 }
  0x8b   :  { %v31_v21 = vpop.permute.xlu0 %30 }
  0x8c   :  { %vm32_vm1 = vcmp.eq.s32.totalorder %v28_v20, %v31_v21 }
  0x8d   :  { %189 = vmatmul.mubr.msk.f32.vlgmr.msra.gmra.mxu0 %vm32_vm1, %v250_v22 }
 0x14d   :  { %v117_v23 = vpop.f32.mrf.mxu0 }
 0x14e   :  { %121 = vst [vmem:[#allocation5] sm:$0xff] %v117_v23 }
 0x14f   :  { %v190_v24 = vpop.f32.mrf.mxu0 }
 0x150   :  { %231 = shalt.err (!%p228_p9)
}
 0x151   :  { %131 = dma.vmem_to_hbm [thread:$0]  %s129_s1, 128, %s278_s2, [#allocation4]  }
 0x152   :  { %242 = dma.done.wait [#allocation4], 128  }
 0x153   :  { %243 = vsyncadd [#allocation4], 4294967168 }
 0x154   :  { %135 = vsyncpa [#allocation3], 1 }
 0x155   :  { %136 = vsyncpa [#allocation4], 1 }

</bundles_post_ra>
